<compile_context>
chip_gen: v7x
topology: tpu7x:2x2x1
jax: 0.10.0
libtpu: 0.0.40
codegen_flags: <defaults>
</compile_context>

<pallas_src>
import functools

import jax
import jax.numpy as jnp
from jax.experimental import pallas as pl
from jax.experimental.pallas import tpu as pltpu


# ---------------------------------------------------------------------------
# Kernel
# ---------------------------------------------------------------------------
def _rms_norm_kernel(*refs, eps, inv_n, has_weight, narrow_store):
    # refs = ([w_ref,] x_ref, o_ref)
    #   w_ref : (1, 1) scalar affine weight in SMEM (only if has_weight)
    #   x_ref / o_ref : (block_rows, padded_hidden) tile in VMEM
    if has_weight:
        w_ref, x_ref, o_ref = refs
    else:
        x_ref, o_ref = refs

    x_in = x_ref[...]
    xf = x_in.astype(jnp.float32)

    # Padded lanes are zero, so sum-of-squares is unaffected; divide by the
    # true hidden size (inv_n) rather than the padded width.
    mean_sq = jnp.sum(xf * xf, axis=-1, keepdims=True) * inv_n

    # rsqrt lowers to the EUP slot; fold the scalar weight into the per-row
    # scale so only one broadcast multiply remains on the VPU.
    scale = jax.lax.rsqrt(mean_sq + eps)
    if has_weight:
        scale = scale * w_ref[0, 0]

    if narrow_store:
        # bf16 store path (v6e/v7x): avoid a second full-tile f32 temporary.
        o_ref[...] = x_in * scale.astype(x_in.dtype)
    else:
        o_ref[...] = (xf * scale).astype(o_ref.dtype)


# ---------------------------------------------------------------------------
# Generation-aware sizing helpers
# ---------------------------------------------------------------------------
def _tpu_generation():
    """Best-effort TPU generation from device_kind; None if unknown."""
    try:
        kind = jax.devices()[0].device_kind.lower().replace(" ", "")
    except Exception:
        return None
    if "v7" in kind or "tpu7" in kind or "7x" in kind:
        return 7
    if "v6" in kind:
        return 6
    if "v5" in kind:
        return 5
    if "v4" in kind:
        return 4
    return None


def _budgets(gen):
    """(max_tile_bytes, vmem_limit_bytes, cores_per_chip) per generation."""
    if gen == 7:
        # 64 MiB physical VMEM per TC -> small tiles, conservative scoped limit.
        return 3 << 20, 48 << 20, 2
    if gen == 6:
        return 8 << 20, 96 << 20, 1
    if gen == 5:
        # Lowest HBM BW: larger tiles amortize per-grid-step overhead;
        # 128 MiB physical VMEM gives plenty of headroom.
        return 12 << 20, 96 << 20, 1
    # Unknown / older: conservative.
    return 4 << 20, 48 << 20, 1


def _choose_block_rows(rows, padded_hidden, max_tile_bytes, num_cores):
    """Pick the row-tile size.

    As large as the budget allows (amortize ~0.35 us per-grid-step overhead,
    saturate HBM BW), sized against the f32 COMPUTE footprint of a tile, while
    guaranteeing enough grid steps for the software pipeline and for splitting
    the "parallel" row axis across both TensorCores on v7x.
    """
    row_bytes = max(1, padded_hidden * 4)  # f32 compute-dtype footprint
    br = max(8, (max_tile_bytes // row_bytes) // 8 * 8)

    if rows <= 8:
        # Single block covering the whole (possibly <8) row axis:
        # block == full array dim satisfies the (8,128) constraint.
        return rows

    # Guarantee >= 2 grid steps (>= 4 on dual-TC chips) when there are enough
    # rows to split; neutral on single-TC chips, up to ~2x on v7x.
    min_steps = min(2 * num_cores, max(1, rows // 8))
    if min_steps > 1:
        br = min(br, max(8, (rows // min_steps) // 8 * 8))

    return min(br, rows)


# ---------------------------------------------------------------------------
# Wrapper
# ---------------------------------------------------------------------------
def rms_layer_norm(x, weight=None, *, eps=1e-8, block_rows=None):
    """RMS layer norm over the last axis of x, scaled by scalar `weight`.

    weight=None corresponds to affine=False (identity scale).
    """
    orig_shape = x.shape
    hidden = orig_shape[-1]
    x2d = x.reshape(-1, hidden)
    rows = x2d.shape[0]

    # Pad hidden to a multiple of 128 so loads, the cross-lane reduce and the
    # stores are all lane-dense (unmasked). Zero padding does not change the
    # sum of squares; the kernel divides by the true hidden.
    pad = (-hidden) % 128
    padded_hidden = hidden + pad
    if pad:
        x2d = jnp.pad(x2d, ((0, 0), (0, pad)))

    gen = _tpu_generation()
    max_tile_bytes, vmem_limit_bytes, num_cores = _budgets(gen)

    if block_rows is None:
        block_rows = _choose_block_rows(rows, padded_hidden,
                                        max_tile_bytes, num_cores)
    block_rows = max(1, min(block_rows, rows))

    has_weight = weight is not None
    narrow_store = (x2d.dtype == jnp.bfloat16) and gen in (6, 7)

    kernel = functools.partial(
        _rms_norm_kernel,
        eps=float(eps),
        inv_n=1.0 / float(hidden),
        has_weight=has_weight,
        narrow_store=narrow_store,
    )

    # Input block spec; on v7x a third input buffer hides DMA issue latency
    # for the small tiles used there.
    x_spec_kwargs = {}
    if gen == 7:
        x_spec_kwargs["pipeline_mode"] = pl.Buffered(3)
    x_spec = pl.BlockSpec((block_rows, padded_hidden), lambda i: (i, 0),
                          **x_spec_kwargs)

    in_specs = [x_spec]
    operands = [x2d]
    if has_weight:
        in_specs.insert(0, pl.BlockSpec(memory_space=pltpu.SMEM))
        operands.insert(0, jnp.asarray(weight, dtype=jnp.float32).reshape(1, 1))

    out = pl.pallas_call(
        kernel,
        out_shape=jax.ShapeDtypeStruct((rows, padded_hidden), x.dtype),
        grid=(pl.cdiv(rows, block_rows),),
        in_specs=in_specs,
        out_specs=pl.BlockSpec((block_rows, padded_hidden), lambda i: (i, 0)),
        compiler_params=pltpu.CompilerParams(
            dimension_semantics=("parallel",),
            vmem_limit_bytes=vmem_limit_bytes,
        ),
    )(*operands)

    if pad:
        out = out[:, :hidden]
    return out.reshape(orig_shape)


def rms_layer_norm_ref(x, weight, eps=1e-8):
    rms = jnp.sqrt(jnp.mean(x * x, axis=-1, keepdims=True) + eps)
    y = x / rms
    if weight is not None:
        y = y * weight
    return y


# ---------------------------------------------------------------------------
# Self-test
# ---------------------------------------------------------------------------
if __name__ == "__main__":
    key = jax.random.PRNGKey(0)
    eps = 1e-8

    # 1) Lane-dense f32 case, affine=True (weight init = ones(()) like torch).
    batch, seq, hidden = 2, 8, 128
    x = jax.random.normal(key, (batch, seq, hidden), dtype=jnp.float32)
    weight = jnp.ones((), dtype=jnp.float32)

    y = jax.block_until_ready(rms_layer_norm(x, weight, eps=eps))
    y_ref = rms_layer_norm_ref(x, weight, eps)
    assert y.shape == x.shape
    assert jnp.allclose(y, y_ref, atol=1e-5, rtol=1e-5), "mismatch vs reference"

    # 2) Non-multiple-of-128 hidden + partial tail blocks + affine=False.
    x2 = jax.random.normal(jax.random.PRNGKey(1), (20, 96), dtype=jnp.float32)
    y2 = jax.block_until_ready(rms_layer_norm(x2, None, eps=eps, block_rows=8))
    y2_ref = rms_layer_norm_ref(x2, None, eps)
    assert y2.shape == x2.shape
    assert jnp.allclose(y2, y2_ref, atol=1e-5, rtol=1e-5), "pad/tail mismatch"

    # 3) bf16 input (exercises the f32-accumulate / narrow-store path).
    x3 = jax.random.normal(jax.random.PRNGKey(2), (32, 256), dtype=jnp.bfloat16)
    y3 = jax.block_until_ready(rms_layer_norm(x3, weight, eps=eps))
    y3_ref = rms_layer_norm_ref(x3.astype(jnp.float32), weight, eps)
    assert y3.shape == x3.shape
    assert jnp.allclose(y3.astype(jnp.float32), y3_ref, atol=2e-2, rtol=2e-2), \
        "bf16 mismatch"

    print("KERNEL_OK")
</pallas_src>

<mosaic_0001>
module attributes {stable_mosaic.version = 11 : i64} {
  func.func @_rms_norm_kernel(%arg0: i32, %arg1: memref<1x1xf32, #tpu.memory_space<smem>>, %arg2: memref<8x128xf32, #tpu.memory_space<vmem>>, %arg3: memref<8x128xf32, #tpu.memory_space<vmem>>) attributes {dimension_semantics = [#tpu.dimension_semantics<parallel>], iteration_bounds = array<i64: 2>, scalar_prefetch = 0 : i64, scratch_operands = 0 : i64, tpu.core_type = #tpu.core_type<tc>, window_params = [{transform_indices = @transform_0, window_bounds = array<i64: 1, 1>}, {transform_indices = @transform_1, window_bounds = array<i64: 8, 128>}, {transform_indices = @transform_2, window_bounds = array<i64: 8, 128>}]} {
    %c0 = arith.constant 0 : index
    %c0_0 = arith.constant 0 : index
    %0 = vector.load %arg2[%c0, %c0_0] : memref<8x128xf32, #tpu.memory_space<vmem>>, vector<8x128xf32>
    %1 = arith.mulf %0, %0 : vector<8x128xf32>
    %cst = arith.constant dense<0.000000e+00> : vector<8xf32>
    %2 = vector.multi_reduction <add>, %1, %cst [1] : vector<8x128xf32> to vector<8xf32>
    %3 = vector.shape_cast %2 : vector<8xf32> to vector<8x1xf32>
    %cst_1 = arith.constant 7.812500e-03 : f32
    %4 = vector.broadcast %cst_1 : f32 to vector<8x1xf32>
    %5 = arith.mulf %3, %4 : vector<8x1xf32>
    %cst_2 = arith.constant 9.99999993E-9 : f32
    %6 = vector.broadcast %cst_2 : f32 to vector<8x1xf32>
    %7 = arith.addf %5, %6 : vector<8x1xf32>
    %8 = math.rsqrt %7 : vector<8x1xf32>
    %c0_3 = arith.constant 0 : index
    %c0_4 = arith.constant 0 : index
    %9 = memref.load %arg1[%c0_3, %c0_4] : memref<1x1xf32, #tpu.memory_space<smem>>
    %10 = vector.broadcast %9 : f32 to vector<8x1xf32>
    %11 = arith.mulf %8, %10 : vector<8x1xf32>
    %12 = vector.broadcast %11 : vector<8x1xf32> to vector<8x128xf32>
    %13 = arith.mulf %0, %12 : vector<8x128xf32>
    %c0_5 = arith.constant 0 : index
    %c0_6 = arith.constant 0 : index
    %14 = vector.load %arg3[%c0_5, %c0_6] : memref<8x128xf32, #tpu.memory_space<vmem>>, vector<8x128xf32>
    tpu.vector_store %arg3[%c0_5, %c0_6], %13 {strides = array<i32>} : memref<8x128xf32, #tpu.memory_space<vmem>>, vector<8x128xf32>,
    return
  }
  func.func @transform_0(%arg0: i32) -> (i32, i32) {
    %c0_i32 = arith.constant 0 : i32
    %c0_i32_0 = arith.constant 0 : i32
    %c0_i32_1 = arith.constant 0 : i32
    return %c0_i32, %c0_i32_0 : i32, i32
  }
  func.func @transform_1(%arg0: i32) -> (i32, i32) {
    %c0_i32 = arith.constant 0 : i32
    %c0_i32_0 = arith.constant 0 : i32
    return %arg0, %c0_i32 : i32, i32
  }
  func.func @transform_2(%arg0: i32) -> (i32, i32) {
    %c0_i32 = arith.constant 0 : i32
    %c0_i32_0 = arith.constant 0 : i32
    return %arg0, %c0_i32 : i32, i32
  }
}

</mosaic_0001>

<bundles_post_ra>
// kernel: tpu_custom_call.1
= control target key start
LH: loop header
LB: loop body
LE: loop exit
PB: predicated region body
PF: predicated region fallthrough
CT: control target
= control target key end

     0   :  { %s595_s0 = inlined_call_operand.<no memory space> [shape: f32[1,1], index: 0, kind: input, shape index: {}]   ;;  %s596_s1 = inlined_call_operand.hbm [shape: f32[16,128], index: 1, kind: input, shape index: {}]   ;;  %s597_s2 = inlined_call_operand.hbm [shape: f32[16,128], index: 2, kind: output, shape index: {}]  }
   0x1   :  { %7 = sst [smem:[#allocation2]] %s595_s0 }
   0x2   :  { %8 = vsyncpa [#allocation4], 0 }
   0x3   :  { %10 = vsyncpa [#allocation4 + $0x1], 0 }
   0x4   :  { %11 = vsyncpa [#allocation5], 0 }
   0x5   :  { %13 = vsyncpa [#allocation5 + $0x1], 0  ;;  %s434_s11 = smov 0   ;;  %s436_s12 = smov 0  }
   0x6   :  { %s438_s13 = smov 0   ;;  %s440_s14 = smov 0  }
   0x7 LB: > { %s455_s0 = sadd.s32 4294967295, %s412_s14   ;;  %s256_s15 = sadd.s32 4294967294, %s412_s14   ;;  %s412_s14 = sphi %s440_s14, %s612_s14   ;;  %s408_s13 = sphi %s438_s13, %s611_s13   ;;  %s404_s12 = sphi %s436_s12, %s610_s12   ;;  %s400_s11 = sphi %s434_s11, %s609_s11  }
   0x8   : > { %s459_s16 = sadd.s32 1, %s412_s14   ;;  %s47_s17 = sadd.s32 1, %s408_s13 }
   0x9   : > { %s44_s18 = ssub.s32 %s412_s14, %s459_s16  ;;  %p54_p0 = scmp.ne.s32.totalorder %s408_s13, %s404_s12 }
   0xa   : > { %p45_p1 = scmp.eq.s32.totalorder %s44_s18, 0  ;;  %p55_p2 = scmp.eq.s32.totalorder %s412_s14, 0 }
   0xb   : > { %p60_p3 = scmp.ne.s32.totalorder %s404_s12, %s400_s11  ;;  %p61_p4 = scmp.eq.s32.totalorder %s455_s0, 0 }
   0xc   : > { %s471_s19 = scalar_select %p45_p1, %s408_s13, %s47_s17  }
   0xd   : > { %p473_p5 = por %p55_p2, %p54_p0  ;;  %p477_p6 = por %p61_p4, %p60_p3 }
   0xe   : > { %p84_p7 = scmp.eq.s32.totalorder %s455_s0, 1  ;;  %p90_p8 = scmp.eq.s32.totalorder %s256_s15, 1 }
   0xf   : > { %p280_p10 = scmp.lt.s32.totalorder %s412_s14, 2  ;;  %s113_s24 = sand.u32 1, %s408_s13  }
  0x10   : > { %p484_p11 = por %p84_p7, %p54_p0  ;;  %p488_p12 = por %p90_p8, %p60_p3 }
  0x11   : > { %s260_s25 = sshll.u32 %s412_s14, 7  ;;  %s259_s26 = sshll.u32 %s113_s24, 3 }
  0x12   : > { %s601_s22 = scalar_select %p484_p11, 1, 0 }
  0x13   : > { %s602_s23 = scalar_select %p488_p12, 1, 0 }
  0x14   : > { %s497_s29 = scalar_lea.hbm %s596_s1, %s260_s25  ;;  %s117_s30 = scalar_lea.vmem [#allocation3], %s259_s26 }
  0x15   : > { %s124_s3 = sshll.u32 %s117_s30, 4  ;;  %p501_p13 = pnand %p280_p10, %p473_p5  ;;  %s505_s3 = int_to_ptr.vmem [resolvable:$true] %s124_s3 }
  0x16   : > { %s114_s5 = scalar_lea.sflag [#allocation4], %s113_s24  ;;  %s316_s6 = scalar_lea.hbm %s497_s29, 128 }
  0x17   : > { %p317_p2 = scmp.ne.s32.totalorder %s497_s29, %s316_s6  ;;  %p318_p3 = pneg %p501_p13 }
  0x18   : > { %s321_s9 = scalar_lea.hbm %s596_s1, 256  ;;  %p322_p5 = scmp.lt.u32.totalorder %s497_s29, %s596_s1 }
  0x19   : > { %p319_p4 = pnand %p318_p3, %p317_p2  ;;  %p323_p8 = scmp.lt.u32.totalorder %s321_s9, %s316_s6 }
  0x1a   : > { %p325_p9 = scmp.lt.u32.totalorder %s316_s6, %s497_s29 }
  0x1b   : > { %p320_p7 = pneg %p319_p4  ;;  %p324_p10 = por %p323_p8, %p322_p5 }
  0x1d   : > { %p326_p0 = por %p325_p9, %p324_p10 }
  0x1f   : > { %p327_p1 = pnand %p326_p0, %p320_p7 }
  0x21   : > { %330 = shalt.err (!%p327_p1)
}
  0x22   : > { %s331_s17 = scalar_lea.vmem %s505_s3, 128  ;;  %s414_s18 = smov [#allocation3]  }
  0x23   : > { %p332_p2 = scmp.ne.s32.totalorder %s505_s3, %s331_s17  ;;  %s336_s20 = sshll.u32 %s414_s18, 4  ;;  %s337_s20 = int_to_ptr.vmem [resolvable:$false] %s336_s20 }
  0x24   : > { %s338_s24 = scalar_lea.vmem %s337_s20, 256  ;;  %p339_p11 = scmp.lt.s32.totalorder %s505_s3, %s337_s20 }
  0x25   : > { %p334_p4 = pnand %p332_p2, %p318_p3  ;;  %p340_p5 = scmp.lt.s32.totalorder %s338_s24, %s331_s17 }
  0x27   : > { %p335_p12 = pneg %p334_p4  ;;  %p341_p8 = por %p340_p5, %p339_p11 }
  0x29   : > { %p342_p9 = pnand %p341_p8, %p335_p12 }
  0x2b   : > { %345 = shalt.err (!%p342_p9)
}
  0x2c   : > { %275 = dma.hbm_to_vmem [thread:$0]  (!%p501_p13), %s497_s29, 128, %s505_s3, %s114_s5  }
  0x2d   : > { %p604_p0 = scmp.lt.s32.totalorder %s412_s14, 3  ;;  %p605_p1 = scmp.ge.s32.totalorder %s412_s14, 1 }
  0x2f   : > { %p130_p3 = pnand %p605_p1, %p604_p0 }
  0x30   : > { %s539_s25 = sand.u32 (!%p130_p3), 1, %s404_s12  }
  0x31   : > { %133 = sbr.rel (%p130_p3) target bundleno = 235 (0xeb), region = 28  ;;  %s262_s26 = sshll.u32 (!%p130_p3), %s539_s25, 3 }
  0x32   : > { %s136_s27 = scalar_lea.sflag (!%p130_p3), [#allocation4], %s539_s25  ;;  %s139_s28 = scalar_lea.vmem (!%p130_p3), [#allocation3], %s262_s26 }
  0x38   : > { %391 = dma.done.wait (%p477_p6), %s136_s27, 128  }
  0x39   : > { %393 = vsyncadd (%p477_p6), %s136_s27, 4294967168  ;;  %v160_v0 = vld [vmem:[%s139_s28] sm:$0xff]  ;;  %s167_s29 = sld [smem:[#allocation2]]  ;;  %s265_s30 = sshll.u32 %s455_s0, 7 }
  0x3a   : > { %v161_v1 = vmul.f32 %v160_v0, %v160_v0  ;;  %s159_s3 = scalar_lea.vmem [#allocation6], %s262_s26  ;;  %s551_s6 = scalar_lea.hbm %s597_s2, %s265_s30 }
  0x3b   : > { %s186_s4 = sshll.u32 %s159_s3, 4  ;;  %s173_s7 = scalar_lea.sflag [#allocation5], %s539_s25  ;;  %s553_s4 = int_to_ptr.vmem [resolvable:$true] %s186_s4 }
  0x3c   : > { %162 = vadd.xlane.f32.xlu0 %v161_v1  ;;  %s346_s8 = scalar_lea.vmem %s553_s4, 128  ;;  %p606_p11 = scmp.ne.s32.totalorder %s601_s22, 0 }
  0x3d   : > { %p347_p6 = scmp.ne.s32.totalorder %s553_s4, %s346_s8  ;;  %s415_s0 = smov [#allocation6]  }
  0x3e   : > { %s350_s9 = sshll.u32 %s415_s0, 4  ;;  %s351_s9 = int_to_ptr.vmem [resolvable:$false] %s350_s9 }
  0x3f   : > { %v168_v5 = vstv %s167_s29  ;;  %p348_p12 = pnand %p347_p6, %p606_p11  ;;  %s352_s10 = scalar_lea.vmem %s351_s9, 256 }
  0x40   : > { %p353_p7 = scmp.lt.s32.totalorder %s553_s4, %s351_s9  ;;  %p354_p10 = scmp.lt.s32.totalorder %s352_s10, %s346_s8 }
  0x41   : > { %p349_p13 = pneg %p348_p12 }
  0x42   : > { %p355_p2 = por %p354_p10, %p353_p7 }
  0x44   : > { %p356_p4 = pnand %p355_p2, %p349_p13 }
  0xc9   : > { %v163_v2 = vpop.xlane.xlu0 %162 }
  0xca   : > { %v164_v3 = vmul.f32 0.0078125, %v163_v2 }
  0xcc   : > { %v165_v4 = vadd.f32 1e-08, %v164_v3 }
  0xce   : > { %314 = vrsqrt.f32 %v165_v4 }
  0xd8   : > { %v315_v6 = vpop.eup %314 }
  0xd9   : > { %v169_v7 = vmul.f32 %v315_v6, %v168_v5 }
  0xdb   : > { %v170_v8 = vmul.f32 %v169_v7, %v160_v0 }
  0xdd   : > { %171 = vst [vmem:[%s159_s3] sm:$0xff] %v170_v8 }
  0xde   : > { %359 = shalt.err (!%p356_p4)
}
  0xdf   : > { %s360_s15 = scalar_lea.hbm %s551_s6, 128  ;;  %s364_s20 = scalar_lea.hbm %s597_s2, 256 }
  0xe0   : > { %p361_p5 = scmp.ne.s32.totalorder %s551_s6, %s360_s15  ;;  %p365_p0 = scmp.lt.u32.totalorder %s551_s6, %s597_s2 }
  0xe1   : > { %p366_p1 = scmp.lt.u32.totalorder %s364_s20, %s360_s15  ;;  %p368_p6 = scmp.lt.u32.totalorder %s360_s15, %s551_s6 }
  0xe2   : > { %p362_p8 = pnand %p361_p5, %p606_p11 }
  0xe3   : > { %p367_p3 = por %p366_p1, %p365_p0 }
  0xe4   : > { %p363_p9 = pneg %p362_p8 }
  0xe5   : > { %p369_p12 = por %p368_p6, %p367_p3 }
  0xe7   : > { %p370_p13 = pnand %p369_p12, %p363_p9 }
  0xe9   : > { %373 = shalt.err (!%p370_p13)
}
  0xea   : > { %270 = dma.vmem_to_hbm [thread:$0]  (%p606_p11), %s553_s4, 128, %s551_s6, %s173_s7  }
  0xeb PF: > { %s198_s26 = sand.u32 1, %s400_s11   ;;  %p607_p7 = scmp.ne.s32.totalorder %s602_s23, 0 }
  0xec   : > { %p608_p10 = scmp.ge.s32.totalorder %s412_s14, 2  ;;  %s199_s27 = scalar_lea.sflag [#allocation5], %s198_s26 }
  0xee   : > { %p277_p2 = pnand %p608_p10, %p607_p7 }
  0xf0   : > { %395 = dma.done.wait (!%p277_p2), %s199_s27, 128  }
  0xf1   : > { %397 = vsyncadd (!%p277_p2), %s199_s27, 4294967168  ;;  %p16_p4 = scmp.ge.s32.totalorder %s459_s16, 4   ;;  %s609_s11 = smov %s404_s12 }
  0xf2   : > { %s610_s12 = smov %s408_s13  ;;  %s611_s13 = smov %s471_s19 }
  0xf3   : > { %s612_s14 = smov %s459_s16  ;;  %18 = sbr.rel (!%p16_p4) target bundleno = 7 (0x7), region = 73 }
  0xfa   :  { %204 = vsyncpa [#allocation4], 1 }
  0xfb   :  { %206 = vsyncpa [#allocation4 + $0x1], 1 }
  0xfc   :  { %207 = vsyncpa [#allocation5], 1 }
  0xfd   :  { %209 = vsyncpa [#allocation5 + $0x1], 1 }

</bundles_post_ra>
